<compile_context>
chip_gen: v6e
topology: v6e:2x2x1
jax: 0.10.0
libtpu: 0.0.40
codegen_flags: <defaults>
</compile_context>

<pallas_src>
import functools

import jax
import jax.numpy as jnp
from jax.experimental import pallas as pl
from jax.experimental.pallas import tpu as pltpu

HIDDEN = 100
OUT = 2
HP = 128      # hidden padded to lane width
OP = 128      # output padded to lane width
TB_MAX = 256  # batch tile (multiple of 256 -> fills v6e/v7x 256-wide MXU; 8-aligned)


def _mlp_kernel(x_ref, w1_ref, b1_ref, w2_ref, b2_ref, w3_ref, b3_ref, o_ref):
    # fc1 + relu
    h1 = jnp.dot(x_ref[...], w1_ref[...], preferred_element_type=jnp.float32)
    h1 = jnp.maximum(h1 + b1_ref[...], 0.0)
    # fc2 + relu
    h2 = jnp.dot(h1, w2_ref[...], preferred_element_type=jnp.float32)
    h2 = jnp.maximum(h2 + b2_ref[...], 0.0)
    # fc3 (no activation)
    o = jnp.dot(h2, w3_ref[...], preferred_element_type=jnp.float32) + b3_ref[...]
    o_ref[...] = o.astype(o_ref.dtype)


@functools.partial(jax.jit, static_argnames=("dim",))
def fc_2x100_forward(x, params, dim):
    """x: any shape whose trailing dims flatten to `dim` (e.g. NCHW). Returns (N, 2)."""
    w1, b1, w2, b2, w3, b3 = params  # already padded / transposed to (in, out)
    xf = x.reshape(-1, dim).astype(jnp.float32)
    n = xf.shape[0]

    # Batch tile: large (256) for throughput, shrunk (but kept 8-aligned) for tiny
    # batches so we don't compute on hundreds of garbage rows.
    tb = min(TB_MAX, ((n + 7) // 8) * 8)
    grid = (pl.cdiv(n, tb),)

    # Advisory cost hint for XLA's scheduler around the custom call.
    cost = pl.CostEstimate(
        flops=2 * n * (dim * HP + HP * HP + HP * OP),
        transcendentals=0,
        bytes_accessed=4 * (n * dim + n * OP + dim * HP + HP * HP + HP * OP + 3 * HP),
    )

    out = pl.pallas_call(
        _mlp_kernel,
        out_shape=jax.ShapeDtypeStruct((n, OP), jnp.float32),
        grid_spec=pltpu.PrefetchScalarGridSpec(
            num_scalar_prefetch=0,
            grid=grid,
            in_specs=[
                pl.BlockSpec((tb, dim), lambda i: (i, 0)),   # x tile (streamed)
                pl.BlockSpec((dim, HP), lambda i: (0, 0)),   # W1 (resident)
                pl.BlockSpec((1, HP), lambda i: (0, 0)),     # b1
                pl.BlockSpec((HP, HP), lambda i: (0, 0)),    # W2
                pl.BlockSpec((1, HP), lambda i: (0, 0)),     # b2
                pl.BlockSpec((HP, OP), lambda i: (0, 0)),    # W3
                pl.BlockSpec((1, OP), lambda i: (0, 0)),     # b3
            ],
            out_specs=pl.BlockSpec((tb, OP), lambda i: (i, 0)),
        ),
        compiler_params=pltpu.CompilerParams(
            # batch axis is independent -> shards across the 2 TCs on v7x.
            dimension_semantics=("parallel",),
        ),
        cost_estimate=cost,
    )(xf, w1, b1, w2, b2, w3, b3)

    # TODO(synk): for dim >> 8K, add a K-axis grid dim + f32 accumulator scratch so
    # the (tb, dim) x tile and (dim, 128) W1 block stay within v7x's 32 MiB scoped VMEM.
    return out[:, :OUT]


def init_params(key, dim):
    """Deterministic init mimicking torch.nn.Linear (uniform +-1/sqrt(fan_in)).
    Returns weights transposed to (in, out) and zero-padded to lane width."""
    ks = jax.random.split(key, 6)

    def linear(kw, kb, fan_in, fan_out):
        bound = 1.0 / jnp.sqrt(fan_in)
        w = jax.random.uniform(kw, (fan_in, fan_out), jnp.float32, -bound, bound)
        b = jax.random.uniform(kb, (fan_out,), jnp.float32, -bound, bound)
        return w, b

    w1, b1 = linear(ks[0], ks[1], dim, HIDDEN)
    w2, b2 = linear(ks[2], ks[3], HIDDEN, HIDDEN)
    w3, b3 = linear(ks[4], ks[5], HIDDEN, OUT)

    # zero-pad feature dims to 128 lanes (exact: padded columns contribute 0
    # through matmul / bias-add / ReLU, so results are bit-identical to unpadded)
    w1p = jnp.zeros((dim, HP), jnp.float32).at[:, :HIDDEN].set(w1)
    b1p = jnp.zeros((1, HP), jnp.float32).at[0, :HIDDEN].set(b1)
    w2p = jnp.zeros((HP, HP), jnp.float32).at[:HIDDEN, :HIDDEN].set(w2)
    b2p = jnp.zeros((1, HP), jnp.float32).at[0, :HIDDEN].set(b2)
    w3p = jnp.zeros((HP, OP), jnp.float32).at[:HIDDEN, :OUT].set(w3)
    b3p = jnp.zeros((1, OP), jnp.float32).at[0, :OUT].set(b3)
    return (w1p, b1p, w2p, b2p, w3p, b3p), (w1, b1, w2, b2, w3, b3)


def _reference(x, raw_params, dim):
    w1, b1, w2, b2, w3, b3 = raw_params
    xr = x.reshape(-1, dim)
    ref = jnp.maximum(xr @ w1 + b1, 0.0)
    ref = jnp.maximum(ref @ w2 + b2, 0.0)
    return ref @ w3 + b3


if __name__ == "__main__":
    key = jax.random.PRNGKey(0)
    kx, kx2, kp = jax.random.split(key, 3)

    # small NCHW input: batch=2, channels=4, spatial=16x16  ->  dim = 4*16*16 = 1024
    B, C, H, W = 2, 4, 16, 16
    dim = C * H * W
    x = jax.random.normal(kx, (B, C, H, W), jnp.float32)

    padded_params, raw_params = init_params(kp, dim)

    # --- tiny batch (single partial tile) ---
    y = fc_2x100_forward(x, padded_params, dim)
    y = jax.block_until_ready(y)
    ref = _reference(x, raw_params, dim)
    assert y.shape == (B, OUT), y.shape
    assert jnp.allclose(y, ref, rtol=1e-5, atol=1e-5), float(jnp.max(jnp.abs(y - ref)))

    # --- larger batch exercising multi-tile grid + non-divisible tail (no pad path) ---
    B2 = 300
    x2 = jax.random.normal(kx2, (B2, C, H, W), jnp.float32)
    y2 = fc_2x100_forward(x2, padded_params, dim)
    y2 = jax.block_until_ready(y2)
    ref2 = _reference(x2, raw_params, dim)
    assert y2.shape == (B2, OUT), y2.shape
    assert jnp.allclose(y2, ref2, rtol=1e-5, atol=1e-5), float(jnp.max(jnp.abs(y2 - ref2)))

    print("KERNEL_OK")
</pallas_src>

<mosaic_0001>
module attributes {stable_mosaic.version = 11 : i64} {
  func.func @_mlp_kernel(%arg0: i32, %arg1: memref<8x1024xf32, #tpu.memory_space<vmem>>, %arg2: memref<1024x128xf32, #tpu.memory_space<vmem>>, %arg3: memref<1x128xf32, #tpu.memory_space<vmem>>, %arg4: memref<128x128xf32, #tpu.memory_space<vmem>>, %arg5: memref<1x128xf32, #tpu.memory_space<vmem>>, %arg6: memref<128x128xf32, #tpu.memory_space<vmem>>, %arg7: memref<1x128xf32, #tpu.memory_space<vmem>>, %arg8: memref<8x128xf32, #tpu.memory_space<vmem>>) attributes {dimension_semantics = [#tpu.dimension_semantics<parallel>], iteration_bounds = array<i64: 1>, scalar_prefetch = 0 : i64, scratch_operands = 0 : i64, tpu.core_type = #tpu.core_type<tc>, window_params = [{transform_indices = @transform_0, window_bounds = array<i64: 8, 1024>}, {pipeline_mode = #tpu.pipeline_mode<synchronous>, transform_indices = @transform_1, window_bounds = array<i64: 1024, 128>}, {pipeline_mode = #tpu.pipeline_mode<synchronous>, transform_indices = @transform_2, window_bounds = array<i64: 1, 128>}, {pipeline_mode = #tpu.pipeline_mode<synchronous>, transform_indices = @transform_3, window_bounds = array<i64: 128, 128>}, {pipeline_mode = #tpu.pipeline_mode<synchronous>, transform_indices = @transform_4, window_bounds = array<i64: 1, 128>}, {pipeline_mode = #tpu.pipeline_mode<synchronous>, transform_indices = @transform_5, window_bounds = array<i64: 128, 128>}, {pipeline_mode = #tpu.pipeline_mode<synchronous>, transform_indices = @transform_6, window_bounds = array<i64: 1, 128>}, {transform_indices = @transform_7, window_bounds = array<i64: 8, 128>}]} {
    %c0 = arith.constant 0 : index
    %c0_0 = arith.constant 0 : index
    %0 = vector.load %arg1[%c0, %c0_0] : memref<8x1024xf32, #tpu.memory_space<vmem>>, vector<8x1024xf32>
    %c0_1 = arith.constant 0 : index
    %c0_2 = arith.constant 0 : index
    %1 = vector.load %arg2[%c0_1, %c0_2] : memref<1024x128xf32, #tpu.memory_space<vmem>>, vector<1024x128xf32>
    %cst = arith.constant dense<0.000000e+00> : vector<8x128xf32>
    %2 = tpu.matmul %0, %1, %cst {dimension_numbers = #tpu.dot_dimension_numbers<[1], [0], [0], [1], [0, 0, 1, 1], [], []>} : vector<8x1024xf32>, vector<1024x128xf32>, vector<8x128xf32> -> vector<8x128xf32>
    %c0_3 = arith.constant 0 : index
    %c0_4 = arith.constant 0 : index
    %3 = vector.load %arg3[%c0_3, %c0_4] : memref<1x128xf32, #tpu.memory_space<vmem>>, vector<1x128xf32>
    %4 = vector.broadcast %3 : vector<1x128xf32> to vector<8x128xf32>
    %5 = arith.addf %2, %4 : vector<8x128xf32>
    %cst_5 = arith.constant 0.000000e+00 : f32
    %6 = vector.broadcast %cst_5 : f32 to vector<8x128xf32>
    %7 = arith.maximumf %5, %6 : vector<8x128xf32>
    %c0_6 = arith.constant 0 : index
    %c0_7 = arith.constant 0 : index
    %8 = vector.load %arg4[%c0_6, %c0_7] : memref<128x128xf32, #tpu.memory_space<vmem>>, vector<128x128xf32>
    %cst_8 = arith.constant dense<0.000000e+00> : vector<8x128xf32>
    %9 = tpu.matmul %7, %8, %cst_8 {dimension_numbers = #tpu.dot_dimension_numbers<[1], [0], [0], [1], [0, 0, 1, 1], [], []>} : vector<8x128xf32>, vector<128x128xf32>, vector<8x128xf32> -> vector<8x128xf32>
    %c0_9 = arith.constant 0 : index
    %c0_10 = arith.constant 0 : index
    %10 = vector.load %arg5[%c0_9, %c0_10] : memref<1x128xf32, #tpu.memory_space<vmem>>, vector<1x128xf32>
    %11 = vector.broadcast %10 : vector<1x128xf32> to vector<8x128xf32>
    %12 = arith.addf %9, %11 : vector<8x128xf32>
    %cst_11 = arith.constant 0.000000e+00 : f32
    %13 = vector.broadcast %cst_11 : f32 to vector<8x128xf32>
    %14 = arith.maximumf %12, %13 : vector<8x128xf32>
    %c0_12 = arith.constant 0 : index
    %c0_13 = arith.constant 0 : index
    %15 = vector.load %arg6[%c0_12, %c0_13] : memref<128x128xf32, #tpu.memory_space<vmem>>, vector<128x128xf32>
    %cst_14 = arith.constant dense<0.000000e+00> : vector<8x128xf32>
    %16 = tpu.matmul %14, %15, %cst_14 {dimension_numbers = #tpu.dot_dimension_numbers<[1], [0], [0], [1], [0, 0, 1, 1], [], []>} : vector<8x128xf32>, vector<128x128xf32>, vector<8x128xf32> -> vector<8x128xf32>
    %c0_15 = arith.constant 0 : index
    %c0_16 = arith.constant 0 : index
    %17 = vector.load %arg7[%c0_15, %c0_16] : memref<1x128xf32, #tpu.memory_space<vmem>>, vector<1x128xf32>
    %18 = vector.broadcast %17 : vector<1x128xf32> to vector<8x128xf32>
    %19 = arith.addf %16, %18 : vector<8x128xf32>
    %c0_17 = arith.constant 0 : index
    %c0_18 = arith.constant 0 : index
    %20 = vector.load %arg8[%c0_17, %c0_18] : memref<8x128xf32, #tpu.memory_space<vmem>>, vector<8x128xf32>
    tpu.vector_store %arg8[%c0_17, %c0_18], %19 {strides = array<i32>} : memref<8x128xf32, #tpu.memory_space<vmem>>, vector<8x128xf32>,
    return
  }
  func.func @transform_0(%arg0: i32) -> (i32, i32) {
    %c0_i32 = arith.constant 0 : i32
    %c0_i32_0 = arith.constant 0 : i32
    return %arg0, %c0_i32 : i32, i32
  }
  func.func @transform_1(%arg0: i32) -> (i32, i32) {
    %c0_i32 = arith.constant 0 : i32
    %c0_i32_0 = arith.constant 0 : i32
    %c0_i32_1 = arith.constant 0 : i32
    return %c0_i32, %c0_i32_0 : i32, i32
  }
  func.func @transform_2(%arg0: i32) -> (i32, i32) {
    %c0_i32 = arith.constant 0 : i32
    %c0_i32_0 = arith.constant 0 : i32
    %c0_i32_1 = arith.constant 0 : i32
    return %c0_i32, %c0_i32_0 : i32, i32
  }
  func.func @transform_3(%arg0: i32) -> (i32, i32) {
    %c0_i32 = arith.constant 0 : i32
    %c0_i32_0 = arith.constant 0 : i32
    %c0_i32_1 = arith.constant 0 : i32
    return %c0_i32, %c0_i32_0 : i32, i32
  }
  func.func @transform_4(%arg0: i32) -> (i32, i32) {
    %c0_i32 = arith.constant 0 : i32
    %c0_i32_0 = arith.constant 0 : i32
    %c0_i32_1 = arith.constant 0 : i32
    return %c0_i32, %c0_i32_0 : i32, i32
  }
  func.func @transform_5(%arg0: i32) -> (i32, i32) {
    %c0_i32 = arith.constant 0 : i32
    %c0_i32_0 = arith.constant 0 : i32
    %c0_i32_1 = arith.constant 0 : i32
    return %c0_i32, %c0_i32_0 : i32, i32
  }
  func.func @transform_6(%arg0: i32) -> (i32, i32) {
    %c0_i32 = arith.constant 0 : i32
    %c0_i32_0 = arith.constant 0 : i32
    %c0_i32_1 = arith.constant 0 : i32
    return %c0_i32, %c0_i32_0 : i32, i32
  }
  func.func @transform_7(%arg0: i32) -> (i32, i32) {
    %c0_i32 = arith.constant 0 : i32
    %c0_i32_0 = arith.constant 0 : i32
    return %arg0, %c0_i32 : i32, i32
  }
}

</mosaic_0001>

<bundles_post_ra>
// kernel: fc_2x100_forward.1
= control target key start
LH: loop header
LB: loop body
LE: loop exit
PB: predicated region body
PF: predicated region fallthrough
CT: control target
= control target key end

     0   :  { %12 = vsyncpa [#allocation3], 0  ;;  %s1292_s0 = inlined_call_operand.vmem [shape: f32[2,1024], index: 0, kind: input, shape index: {}]   ;;  %s1293_s1 = inlined_call_operand.hbm [shape: f32[1024,128], index: 1, kind: input, shape index: {}]   ;;  %s1294_s2 = inlined_call_operand.vmem [shape: f32[1,128], index: 2, kind: input, shape index: {}]   ;;  %s1295_s3 = inlined_call_operand.vmem [shape: f32[128,128], index: 3, kind: input, shape index: {}]   ;;  %s1296_s4 = inlined_call_operand.vmem [shape: f32[1,128], index: 4, kind: input, shape index: {}]   ;;  %s1297_s5 = inlined_call_operand.hbm [shape: f32[128,128], index: 5, kind: input, shape index: {}]   ;;  %s1298_s6 = inlined_call_operand.vmem [shape: f32[1,128], index: 6, kind: input, shape index: {}]   ;;  %s1299_s7 = inlined_call_operand.hbm [shape: f32[2,128], index: 7, kind: output, shape index: {}]  }
   0x1   :  { %13 = vsyncpa [#allocation6], 0 }
   0x2   :  { %14 = vsyncpa [#allocation4], 0  ;;  %s1108_s24 = smov [#allocation2]  }
   0x3   :  { %s22_s25 = sshll.u32 %s1108_s24, 4  ;;  %s23_s25 = int_to_ptr.vmem [resolvable:$true] %s22_s25 }
   0x4   :  { %s1050_s26 = scalar_lea.vmem %s23_s25, 16384  ;;  %p1055_p1 = scmp.lt.s32.totalorder %s23_s25, %s23_s25 }
   0x5   :  { %p1051_p0 = scmp.ne.s32.totalorder %s23_s25, %s1050_s26  ;;  %p1056_p2 = scmp.lt.s32.totalorder %s1050_s26, %s1050_s26 }
   0x7   :  { %p1057_p3 = por %p1056_p2, %p1055_p1 }
   0x9   :  { %p1058_p4 = pnand %p1057_p3, %p1051_p0 }
   0xb   :  { %1061 = shalt.err (!%p1058_p4)
}
   0xc   :  { %s1109_s27 = smov 128   ;;  %s1110_s28 = smov 8  }
   0xd   :  { %28 = dma.hbm_to_vmem [thread:$0]  %s1293_s1, 16384, %s23_s25, [#allocation3], %s1109_s27, %s1109_s27, %s1110_s28  }
   0xe   :  { %s1111_s8 = smov [#allocation5]  }
   0xf   :  { %s40_s9 = sshll.u32 %s1111_s8, 4  ;;  %s41_s9 = int_to_ptr.vmem [resolvable:$true] %s40_s9 }
  0x10   :  { %s1070_s10 = scalar_lea.vmem %s41_s9, 2048  ;;  %p1075_p6 = scmp.lt.s32.totalorder %s41_s9, %s41_s9 }
  0x11   :  { %p1071_p5 = scmp.ne.s32.totalorder %s41_s9, %s1070_s10  ;;  %p1076_p7 = scmp.lt.s32.totalorder %s1070_s10, %s1070_s10 }
  0x13   :  { %p1077_p8 = por %p1076_p7, %p1075_p6 }
  0x15   :  { %p1078_p9 = pnand %p1077_p8, %p1071_p5 }
  0x17   :  { %1081 = shalt.err (!%p1078_p9)
}
  0x18   :  { %46 = dma.hbm_to_vmem [thread:$0]  %s1297_s5, 2048, %s41_s9, [#allocation6], %s1109_s27, %s1109_s27, %s1110_s28  }
  0x19   :  { %1102 = dma.done.wait [#allocation3], 16384  }
  0x1a   :  { %1103 = vsyncadd [#allocation3], 4294950912 }
  0x1b   :  { %1104 = dma.done.wait [#allocation6], 2048  }
  0x1c   :  { %1105 = vsyncadd [#allocation6], 4294965248  ;;  %v94_v0 = vld [vmem:[#allocation2 + $0xf8] sm:$0xff]  ;;  %v93_v4 = vld [vmem:[#allocation2 + $0xf0] sm:$0xff]  ;;  %v1112_v30 = vmov 1983009808   ;;  %v213_v32 = vlaneseq }
  0x1d   :  { %v126_v1 = vld [vmem:[#allocation2 + $0x1f8] sm:$0xff]  ;;  %776 = vmatprep.subr.mxu0 %v94_v0  ;;  %v125_v5 = vld [vmem:[#allocation2 + $0x1f0] sm:$0xff]  ;;  %v92_v8 = vld [vmem:[#allocation2 + $0xe8] sm:$0xff]  ;;  %v211_v31 = vunpack.c.l.s4 %v1112_v30  ;;  %vm1114_vm0 = vmmov 0  }
  0x1e   :  { %v78_v2 = vld [vmem:[#allocation2 + $0x78] sm:$0xff]  ;;  %811 = vmatprep.subr.mxu1 %v126_v1  ;;  %v77_v6 = vld [vmem:[#allocation2 + $0x70] sm:$0xff]  ;;  %v124_v9 = vld [vmem:[#allocation2 + $0x1e8] sm:$0xff]  ;;  %v214_v42 = vshrl.u32 %v213_v32, 7 }
  0x1f   :  { %v110_v3 = vld [vmem:[#allocation2 + $0x178] sm:$0xff]  ;;  %777 = vmatpush3.msra.mxu0 %v78_v2  ;;  %v109_v7 = vld [vmem:[#allocation2 + $0x170] sm:$0xff]  ;;  %v76_v10 = vld [vmem:[#allocation2 + $0x68] sm:$0xff]  ;;  %v212_v41 = vunpack.c.0.s8 %v211_v31 }
  0x20   :  { %812 = vmatpush3.msra.mxu1 %v110_v3  ;;  %778 = vmatprep.subr.mxu0 %v93_v4  ;;  %v108_v11 = vld [vmem:[#allocation2 + $0x168] sm:$0xff]  ;;  %v91_v12 = vld [vmem:[#allocation2 + $0xe0] sm:$0xff]  ;;  %v90_v16 = vld [vmem:[#allocation2 + $0xd8] sm:$0xff] }
  0x21   :  { %813 = vmatprep.subr.mxu1 %v125_v5  ;;  %779 = vmatpush3.msra.mxu0 %v77_v6  ;;  %v123_v13 = vld [vmem:[#allocation2 + $0x1e0] sm:$0xff]  ;;  %v122_v17 = vld [vmem:[#allocation2 + $0x1d8] sm:$0xff]  ;;  %v89_v20 = vld [vmem:[#allocation2 + $0xd0] sm:$0xff]  ;;  %v1164_v55 = vsub.s32 %v212_v41, %v214_v42 }
  0x22   :  { %814 = vmatpush3.msra.mxu1 %v109_v7  ;;  %780 = vmatprep.subr.mxu0 %v92_v8  ;;  %v75_v14 = vld [vmem:[#allocation2 + $0x60] sm:$0xff]  ;;  %v74_v18 = vld [vmem:[#allocation2 + $0x58] sm:$0xff]  ;;  %v121_v21 = vld [vmem:[#allocation2 + $0x1d0] sm:$0xff] }
  0x23   :  { %815 = vmatprep.subr.mxu1 %v124_v9  ;;  %v107_v15 = vld [vmem:[#allocation2 + $0x160] sm:$0xff]  ;;  %781 = vmatpush3.msra.mxu0 %v76_v10  ;;  %v106_v19 = vld [vmem:[#allocation2 + $0x158] sm:$0xff]  ;;  %v73_v22 = vld [vmem:[#allocation2 + $0x50] sm:$0xff] }
  0x24   :  { %816 = vmatpush3.msra.mxu1 %v108_v11  ;;  %782 = vmatprep.subr.mxu0 %v91_v12  ;;  %v105_v23 = vld [vmem:[#allocation2 + $0x150] sm:$0xff]  ;;  %v88_v24 = vld [vmem:[#allocation2 + $0xc8] sm:$0xff]  ;;  %v87_v28 = vld [vmem:[#allocation2 + $0xc0] sm:$0xff] }
  0x25   :  { %817 = vmatprep.subr.mxu1 %v123_v13  ;;  %783 = vmatpush3.msra.mxu0 %v75_v14  ;;  %v120_v25 = vld [vmem:[#allocation2 + $0x1c8] sm:$0xff]  ;;  %v119_v29 = vld [vmem:[#allocation2 + $0x1c0] sm:$0xff]  ;;  %v86_v35 = vld [vmem:[#allocation2 + $0xb8] sm:$0xff] }
  0x26   :  { %818 = vmatpush3.msra.mxu1 %v107_v15  ;;  %784 = vmatprep.subr.mxu0 %v90_v16  ;;  %v72_v26 = vld [vmem:[#allocation2 + $0x48] sm:$0xff]  ;;  %v71_v33 = vld [vmem:[#allocation2 + $0x40] sm:$0xff]  ;;  %v118_v36 = vld [vmem:[#allocation2 + $0x1b8] sm:$0xff] }
  0x27   :  { %819 = vmatprep.subr.mxu1 %v122_v17  ;;  %785 = vmatpush3.msra.mxu0 %v74_v18  ;;  %v104_v27 = vld [vmem:[#allocation2 + $0x148] sm:$0xff]  ;;  %v103_v34 = vld [vmem:[#allocation2 + $0x140] sm:$0xff]  ;;  %v70_v37 = vld [vmem:[#allocation2 + $0x38] sm:$0xff] }
  0x28   :  { %820 = vmatpush3.msra.mxu1 %v106_v19  ;;  %786 = vmatprep.subr.mxu0 %v89_v20  ;;  %v102_v38 = vld [vmem:[#allocation2 + $0x138] sm:$0xff]  ;;  %v85_v39 = vld [vmem:[#allocation2 + $0xb0] sm:$0xff]  ;;  %v84_v45 = vld [vmem:[#allocation2 + $0xa8] sm:$0xff] }
  0x29   :  { %821 = vmatprep.subr.mxu1 %v121_v21  ;;  %787 = vmatpush3.msra.mxu0 %v73_v22  ;;  %v117_v40 = vld [vmem:[#allocation2 + $0x1b0] sm:$0xff]  ;;  %v116_v46 = vld [vmem:[#allocation2 + $0x1a8] sm:$0xff]  ;;  %v83_v49 = vld [vmem:[#allocation2 + $0xa0] sm:$0xff] }
  0x2a   :  { %822 = vmatpush3.msra.mxu1 %v105_v23  ;;  %788 = vmatprep.subr.mxu0 %v88_v24  ;;  %v69_v43 = vld [vmem:[#allocation2 + $0x30] sm:$0xff]  ;;  %v68_v47 = vld [vmem:[#allocation2 + $0x28] sm:$0xff]  ;;  %v115_v50 = vld [vmem:[#allocation2 + $0x1a0] sm:$0xff] }
  0x2b   :  { %823 = vmatprep.subr.mxu1 %v120_v25  ;;  %789 = vmatpush3.msra.mxu0 %v72_v26  ;;  %v101_v44 = vld [vmem:[#allocation2 + $0x130] sm:$0xff]  ;;  %v100_v48 = vld [vmem:[#allocation2 + $0x128] sm:$0xff]  ;;  %v67_v51 = vld [vmem:[#allocation2 + $0x20] sm:$0xff] }
  0x2c   :  { %824 = vmatpush3.msra.mxu1 %v104_v27  ;;  %790 = vmatprep.subr.mxu0 %v87_v28  ;;  %v99_v52 = vld [vmem:[#allocation2 + $0x120] sm:$0xff]  ;;  %v82_v53 = vld [vmem:[#allocation2 + $0x98] sm:$0xff]  ;;  %v81_v62 = vld [vmem:[#allocation2 + $0x90] sm:$0xff] }
  0x2d   :  { %825 = vmatprep.subr.mxu1 %v119_v29  ;;  %791 = vmatpush3.msra.mxu0 %v71_v33  ;;  %v114_v54 = vld [vmem:[#allocation2 + $0x198] sm:$0xff]  ;;  %v1030_v57 = vld [vmem:[%s1292_s0] ss:$16 sps:$4 sm:$0xff]   ;;  %v1034_v60 = vld [vmem:[%s1292_s0 + $0x4] ss:$16 sps:$4 sm:$0xff]  }
  0x2e   :  { %826 = vmatpush3.msra.mxu1 %v103_v34  ;;  %792 = vmatprep.subr.mxu0 %v86_v35  ;;  %v66_v56 = vld [vmem:[#allocation2 + $0x18] sm:$0xff]  ;;  %v1032_v58 = vld [vmem:[%s1292_s0 + $0x20] ss:$16 sps:$4 sm:$0xff]   ;;  %v1035_v61 = vld [vmem:[%s1292_s0 + $0x24] ss:$16 sps:$4 sm:$0xff]   ;;  %v216_v0 = vrot.slane %v1030_v57, %v1164_v55  ;;  %v223_v6 = vrot.slane %v1034_v60, %v1164_v55 }
  0x2f   :  { %827 = vmatprep.subr.mxu1 %v118_v36  ;;  %793 = vmatpush3.msra.mxu0 %v70_v37  ;;  %v98_v59 = vld [vmem:[#allocation2 + $0x118] sm:$0xff]  ;;  %v113_v63 = vld [vmem:[#allocation2 + $0x190] sm:$0xff]  ;;  %v230_v1 = vrot.slane %v1032_v58, %v1164_v55  ;;  %v80_v4 = vld [vmem:[#allocation2 + $0x88] sm:$0xff]  ;;  %v237_v7 = vrot.slane %v1035_v61, %v1164_v55 }
  0x30   :  { %828 = vmatpush3.msra.mxu1 %v102_v38  ;;  %794 = vmatprep.subr.mxu0 %v85_v39  ;;  %v65_v2 = vld [vmem:[#allocation2 + $0x10] sm:$0xff]  ;;  %v112_v5 = vld [vmem:[#allocation2 + $0x188] sm:$0xff]  ;;  %v79_v10 = vld [vmem:[#allocation2 + $0x80] sm:$0xff] }
  0x31   :  { %829 = vmatprep.subr.mxu1 %v117_v40  ;;  %795 = vmatpush3.msra.mxu0 %v69_v43  ;;  %v97_v3 = vld [vmem:[#allocation2 + $0x110] sm:$0xff]  ;;  %v64_v8 = vld [vmem:[#allocation2 + $0x8] sm:$0xff]  ;;  %v111_v11 = vld [vmem:[#allocation2 + $0x180] sm:$0xff]  ;;  %v239_v12 = vcombine.high %v216_v0, %v230_v1  ;;  %v238_v14 = vcombine.low %v216_v0, %v230_v1  ;;  %v241_v16 = vcombine.high %v223_v6, %v237_v7 }
  0x32   :  { %830 = vmatpush3.msra.mxu1 %v101_v44  ;;  %796 = vmatprep.subr.mxu0 %v84_v45  ;;  %v96_v9 = vld [vmem:[#allocation2 + $0x108] sm:$0xff]  ;;  %v63_v13 = vld [vmem:[#allocation2] sm:$0xff]  ;;  %v158_v17 = vld [vmem:[#allocation2 + $0x2f8] sm:$0xff]  ;;  %v240_v18 = vcombine.low %v223_v6, %v237_v7 }
  0x33   :  { %831 = vmatprep.subr.mxu1 %v116_v46  ;;  %797 = vmatpush3.msra.mxu0 %v68_v47  ;;  %v95_v15 = vld [vmem:[#allocation2 + $0x100] sm:$0xff]  ;;  %v190_v19 = vld [vmem:[#allocation2 + $0x3f8] sm:$0xff]  ;;  %v157_v22 = vld [vmem:[#allocation2 + $0x2f0] sm:$0xff] }
  0x34   :  { %832 = vmatpush3.msra.mxu1 %v100_v48  ;;  %798 = vmatprep.subr.mxu0 %v83_v49  ;;  %v142_v20 = vld [vmem:[#allocation2 + $0x278] sm:$0xff]  ;;  %v189_v23 = vld [vmem:[#allocation2 + $0x3f0] sm:$0xff]  ;;  %v156_v26 = vld [vmem:[#allocation2 + $0x2e8] sm:$0xff] }
  0x35   :  { %833 = vmatprep.subr.mxu1 %v115_v50  ;;  %799 = vmatpush3.msra.mxu0 %v67_v51  ;;  %v174_v21 = vld [vmem:[#allocation2 + $0x378] sm:$0xff]  ;;  %v141_v24 = vld [vmem:[#allocation2 + $0x270] sm:$0xff]  ;;  %v188_v27 = vld [vmem:[#allocation2 + $0x3e8] sm:$0xff] }
  0x36   :  { %834 = vmatpush3.msra.mxu1 %v99_v52  ;;  %800 = vmatprep.subr.mxu0 %v82_v53  ;;  %v173_v25 = vld [vmem:[#allocation2 + $0x370] sm:$0xff]  ;;  %v140_v28 = vld [vmem:[#allocation2 + $0x268] sm:$0xff]  ;;  %v155_v30 = vld [vmem:[#allocation2 + $0x2e0] sm:$0xff] }
  0x37   :  { %835 = vmatprep.subr.mxu1 %v114_v54  ;;  %801 = vmatpush3.msra.mxu0 %v66_v56  ;;  %v172_v29 = vld [vmem:[#allocation2 + $0x368] sm:$0xff]  ;;  %v187_v31 = vld [vmem:[#allocation2 + $0x3e0] sm:$0xff]  ;;  %v154_v34 = vld [vmem:[#allocation2 + $0x2d8] sm:$0xff] }
  0x38   :  { %836 = vmatpush3.msra.mxu1 %v98_v59  ;;  %802 = vmatprep.subr.mxu0 %v81_v62  ;;  %v139_v32 = vld [vmem:[#allocation2 + $0x260] sm:$0xff]  ;;  %v186_v35 = vld [vmem:[#allocation2 + $0x3d8] sm:$0xff]  ;;  %v153_v38 = vld [vmem:[#allocation2 + $0x2d0] sm:$0xff] }
  0x39   :  { %837 = vmatprep.subr.mxu1 %v113_v63  ;;  %803 = vmatpush3.msra.mxu0 %v65_v2  ;;  %v171_v33 = vld [vmem:[#allocation2 + $0x360] sm:$0xff]  ;;  %v138_v36 = vld [vmem:[#allocation2 + $0x258] sm:$0xff]  ;;  %v185_v39 = vld [vmem:[#allocation2 + $0x3d0] sm:$0xff] }
  0x3a   :  { %838 = vmatpush3.msra.mxu1 %v97_v3  ;;  %804 = vmatprep.subr.mxu0 %v80_v4  ;;  %v170_v37 = vld [vmem:[#allocation2 + $0x358] sm:$0xff]  ;;  %v137_v40 = vld [vmem:[#allocation2 + $0x250] sm:$0xff]  ;;  %v152_v42 = vld [vmem:[#allocation2 + $0x2c8] sm:$0xff] }
  0x3b   :  { %839 = vmatprep.subr.mxu1 %v112_v5  ;;  %805 = vmatpush3.msra.mxu0 %v64_v8  ;;  %v169_v41 = vld [vmem:[#allocation2 + $0x350] sm:$0xff]  ;;  %v184_v43 = vld [vmem:[#allocation2 + $0x3c8] sm:$0xff]  ;;  %v151_v46 = vld [vmem:[#allocation2 + $0x2c0] sm:$0xff] }
  0x3c   :  { %840 = vmatpush3.msra.mxu1 %v96_v9  ;;  %806 = vmatprep.subr.mxu0 %v79_v10  ;;  %v136_v44 = vld [vmem:[#allocation2 + $0x248] sm:$0xff]  ;;  %v183_v47 = vld [vmem:[#allocation2 + $0x3c0] sm:$0xff]  ;;  %v150_v50 = vld [vmem:[#allocation2 + $0x2b8] sm:$0xff] }
  0x3d   :  { %841 = vmatprep.subr.mxu1 %v111_v11  ;;  %807 = vmatpush3.msra.mxu0 %v63_v13  ;;  %v168_v45 = vld [vmem:[#allocation2 + $0x348] sm:$0xff]  ;;  %v135_v48 = vld [vmem:[#allocation2 + $0x240] sm:$0xff]  ;;  %v182_v51 = vld [vmem:[#allocation2 + $0x3b8] sm:$0xff] }
  0x3e   :  { %350 = vmatprep.mubr.f32.mxu0 %v239_v12  ;;  %842 = vmatpush3.msra.mxu1 %v95_v15  ;;  %v167_v49 = vld [vmem:[#allocation2 + $0x340] sm:$0xff]  ;;  %v134_v52 = vld [vmem:[#allocation2 + $0x238] sm:$0xff]  ;;  %v149_v54 = vld [vmem:[#allocation2 + $0x2b0] sm:$0xff] }
  0x3f   :  { %351 = vmatmul.mubr.f32.vlgmr.msra.gmra.mxu0 %v238_v14  ;;  %420 = vmatprep.mubr.f32.mxu1 %v241_v16  ;;  %v166_v53 = vld [vmem:[#allocation2 + $0x338] sm:$0xff]  ;;  %v181_v56 = vld [vmem:[#allocation2 + $0x3b0] sm:$0xff]  ;;  %v148_v59 = vld [vmem:[#allocation2 + $0x2a8] sm:$0xff] }
  0x40   :  { %846 = vmatprep.subr.mxu0 %v158_v17  ;;  %881 = vmatprep.subr.mxu1 %v190_v19  ;;  %v133_v57 = vld [vmem:[#allocation2 + $0x230] sm:$0xff]  ;;  %v180_v60 = vld [vmem:[#allocation2 + $0x3a8] sm:$0xff]  ;;  %v147_v63 = vld [vmem:[#allocation2 + $0x2a0] sm:$0xff] }
  0x41   :  { %421 = vmatmul.mubr.f32.vlgmr.msra.gmra.mxu1 %v240_v18  ;;  %847 = vmatpush3.msra.mxu0 %v142_v20  ;;  %v165_v58 = vld [vmem:[#allocation2 + $0x330] sm:$0xff]  ;;  %v132_v61 = vld [vmem:[#allocation2 + $0x228] sm:$0xff]  ;;  %v179_v0 = vld [vmem:[#allocation2 + $0x3a0] sm:$0xff] }
  0x42   :  { %882 = vmatpush3.msra.mxu1 %v174_v21  ;;  %848 = vmatprep.subr.mxu0 %v157_v22  ;;  %v164_v62 = vld [vmem:[#allocation2 + $0x328] sm:$0xff]  ;;  %v131_v1 = vld [vmem:[#allocation2 + $0x220] sm:$0xff]  ;;  %v146_v7 = vld [vmem:[#allocation2 + $0x298] sm:$0xff] }
  0x43   :  { %883 = vmatprep.subr.mxu1 %v189_v23  ;;  %849 = vmatpush3.msra.mxu0 %v141_v24  ;;  %v1036_v2 = vld [vmem:[%s1292_s0 + $0x8] ss:$16 sps:$4 sm:$0xff]   ;;  %v163_v4 = vld [vmem:[#allocation2 + $0x320] sm:$0xff]  ;;  %v1040_v5 = vld [vmem:[%s1292_s0 + $0xc] ss:$16 sps:$4 sm:$0xff]  }
  0x44   :  { %884 = vmatpush3.msra.mxu1 %v173_v25  ;;  %850 = vmatprep.subr.mxu0 %v156_v26  ;;  %v1038_v3 = vld [vmem:[%s1292_s0 + $0x28] ss:$16 sps:$4 sm:$0xff]   ;;  %v1041_v6 = vld [vmem:[%s1292_s0 + $0x2c] ss:$16 sps:$4 sm:$0xff]   ;;  %v145_v11 = vld [vmem:[#allocation2 + $0x290] sm:$0xff]  ;;  %v252_v13 = vrot.slane %v1036_v2, %v1164_v55  ;;  %v259_v17 = vrot.slane %v1040_v5, %v1164_v55 }
  0x45   :  { %885 = vmatprep.subr.mxu1 %v188_v27  ;;  %851 = vmatpush3.msra.mxu0 %v140_v28  ;;  %v178_v8 = vld [vmem:[#allocation2 + $0x398] sm:$0xff]  ;;  %v177_v12 = vld [vmem:[#allocation2 + $0x390] sm:$0xff]  ;;  %v266_v14 = vrot.slane %v1038_v3, %v1164_v55  ;;  %v273_v18 = vrot.slane %v1041_v6, %v1164_v55  ;;  %v144_v19 = vld [vmem:[#allocation2 + $0x288] sm:$0xff] }
  0x46   :  { %886 = vmatpush3.msra.mxu1 %v172_v29  ;;  %852 = vmatprep.subr.mxu0 %v155_v30  ;;  %v130_v9 = vld [vmem:[#allocation2 + $0x218] sm:$0xff]  ;;  %v129_v15 = vld [vmem:[#allocation2 + $0x210] sm:$0xff]  ;;  %v176_v20 = vld [vmem:[#allocation2 + $0x388] sm:$0xff] }
  0x47   :  { %887 = vmatprep.subr.mxu1 %v187_v31  ;;  %853 = vmatpush3.msra.mxu0 %v139_v32  ;;  %v162_v10 = vld [vmem:[#allocation2 + $0x318] sm:$0xff]  ;;  %v161_v16 = vld [vmem:[#allocation2 + $0x310] sm:$0xff]  ;;  %v128_v21 = vld [vmem:[#allocation2 + $0x208] sm:$0xff]  ;;  %v275_v25 = vcombine.high %v252_v13, %v266_v14  ;;  %v277_v27 = vcombine.high %v259_v17, %v273_v18  ;;  %v274_v28 = vcombine.low %v252_v13, %v266_v14  ;;  %v1113_v31 = vmov 0.0  }
  0x48   :  { %888 = vmatpush3.msra.mxu1 %v171_v33  ;;  %854 = vmatprep.subr.mxu0 %v154_v34  ;;  %v160_v22 = vld [vmem:[#allocation2 + $0x308] sm:$0xff]  ;;  %v143_v23 = vld [vmem:[#allocation2 + $0x280] sm:$0xff]  ;;  %v276_v29 = vcombine.low %v259_v17, %v273_v18  ;;  %v582_v30 = vld [vmem:[%s1295_s3 + $0x78] sm:$0xff] }
  0x49   :  { %889 = vmatprep.subr.mxu1 %v186_v35  ;;  %855 = vmatpush3.msra.mxu0 %v138_v36  ;;  %v175_v24 = vld [vmem:[#allocation2 + $0x380] sm:$0xff]  ;;  %v581_v32 = vld [vmem:[%s1295_s3 + $0x70] sm:$0xff]  ;;  %v580_v33 = vld [vmem:[%s1295_s3 + $0x68] sm:$0xff] }
  0x4a   :  { %890 = vmatpush3.msra.mxu1 %v170_v37  ;;  %856 = vmatprep.subr.mxu0 %v153_v38  ;;  %v127_v26 = vld [vmem:[#allocation2 + $0x200] sm:$0xff]  ;;  %v578_v35 = vld [vmem:[%s1295_s3 + $0x58] sm:$0xff]  ;;  %v577_v36 = vld [vmem:[%s1295_s3 + $0x50] sm:$0xff] }
  0x4b   :  { %891 = vmatprep.subr.mxu1 %v185_v39  ;;  %857 = vmatpush3.msra.mxu0 %v137_v40  ;;  %v159_v55 = vld [vmem:[#allocation2 + $0x300] sm:$0xff]  ;;  %v576_v37 = vld [vmem:[%s1295_s3 + $0x48] sm:$0xff]  ;;  %v574_v39 = vld [vmem:[%s1295_s3 + $0x38] sm:$0xff] }
  0x4c   :  { %892 = vmatpush3.msra.mxu1 %v169_v41  ;;  %858 = vmatprep.subr.mxu0 %v152_v42  ;;  %v579_v34 = vld [vmem:[%s1295_s3 + $0x60] sm:$0xff]  ;;  %v573_v40 = vld [vmem:[%s1295_s3 + $0x30] sm:$0xff]  ;;  %v572_v41 = vld [vmem:[%s1295_s3 + $0x28] sm:$0xff] }
  0x4d   :  { %893 = vmatprep.subr.mxu1 %v184_v43  ;;  %859 = vmatpush3.msra.mxu0 %v136_v44  ;;  %v575_v38 = vld [vmem:[%s1295_s3 + $0x40] sm:$0xff]  ;;  %v570_v43 = vld [vmem:[%s1295_s3 + $0x18] sm:$0xff]  ;;  %v569_v44 = vld [vmem:[%s1295_s3 + $0x10] sm:$0xff] }
  0x4e   :  { %894 = vmatpush3.msra.mxu1 %v168_v45  ;;  %860 = vmatprep.subr.mxu0 %v151_v46  ;;  %v571_v42 = vld [vmem:[%s1295_s3 + $0x20] sm:$0xff]  ;;  %v568_v45 = vld [vmem:[%s1295_s3 + $0x8] sm:$0xff] }
  0x4f   :  { %895 = vmatprep.subr.mxu1 %v183_v47  ;;  %861 = vmatpush3.msra.mxu0 %v135_v48  ;;  %v567_v46 = vld [vmem:[%s1295_s3] sm:$0xff]  ;;  %v676_v47 = vld [vmem:[#allocation5 + $0x78] sm:$0xff]  ;;  %v675_v48 = vld [vmem:[#allocation5 + $0x70] sm:$0xff] }
  0x50   :  { %896 = vmatpush3.msra.mxu1 %v167_v49  ;;  %862 = vmatprep.subr.mxu0 %v150_v50  ;;  %v674_v49 = vld [vmem:[#allocation5 + $0x68] sm:$0xff]  ;;  %v673_v50 = vld [vmem:[#allocation5 + $0x60] sm:$0xff] }
  0x51   :  { %897 = vmatprep.subr.mxu1 %v182_v51  ;;  %863 = vmatpush3.msra.mxu0 %v134_v52  ;;  %v672_v51 = vld [vmem:[#allocation5 + $0x58] sm:$0xff]  ;;  %v671_v52 = vld [vmem:[#allocation5 + $0x50] sm:$0xff]  ;;  %v661_v17 = vld [vmem:[#allocation5] sm:$0xff] }
  0x52   :  { %898 = vmatpush3.msra.mxu1 %v166_v53  ;;  %864 = vmatprep.subr.mxu0 %v149_v54  ;;  %v670_v53 = vld [vmem:[#allocation5 + $0x48] sm:$0xff]  ;;  %v669_v54 = vld [vmem:[#allocation5 + $0x40] sm:$0xff] }
  0x53   :  { %899 = vmatprep.subr.mxu1 %v181_v56  ;;  %865 = vmatpush3.msra.mxu0 %v133_v57  ;;  %v668_v56 = vld [vmem:[#allocation5 + $0x38] sm:$0xff]  ;;  %v667_v57 = vld [vmem:[#allocation5 + $0x30] sm:$0xff]  ;;  %v774_v18 = vld [vmem:[%s1296_s4] ss:$0 sm:$0xff] }
  0x54   :  { %900 = vmatpush3.msra.mxu1 %v165_v58  ;;  %866 = vmatprep.subr.mxu0 %v148_v59  ;;  %v666_v58 = vld [vmem:[#allocation5 + $0x28] sm:$0xff]  ;;  %v665_v59 = vld [vmem:[#allocation5 + $0x20] sm:$0xff] }
  0x55   :  { %901 = vmatprep.subr.mxu1 %v180_v60  ;;  %867 = vmatpush3.msra.mxu0 %v132_v61  ;;  %v664_v60 = vld [vmem:[#allocation5 + $0x18] sm:$0xff] }
  0x56   :  { %902 = vmatpush3.msra.mxu1 %v164_v62  ;;  %868 = vmatprep.subr.mxu0 %v147_v63 }
  0x57   :  { %903 = vmatprep.subr.mxu1 %v179_v0  ;;  %869 = vmatpush3.msra.mxu0 %v131_v1  ;;  %v773_v1 = vld [vmem:[%s1294_s2] ss:$0 sm:$0xff] }
  0x58   :  { %904 = vmatpush3.msra.mxu1 %v163_v4  ;;  %870 = vmatprep.subr.mxu0 %v146_v7 }
  0x59   :  { %905 = vmatprep.subr.mxu1 %v178_v8  ;;  %871 = vmatpush3.msra.mxu0 %v130_v9 }
  0x5a   :  { %906 = vmatpush3.msra.mxu1 %v162_v10  ;;  %872 = vmatprep.subr.mxu0 %v145_v11 }
  0x5b   :  { %907 = vmatprep.subr.mxu1 %v177_v12  ;;  %873 = vmatpush3.msra.mxu0 %v129_v15  ;;  %v663_v15 = vld [vmem:[#allocation5 + $0x10] sm:$0xff] }
  0x5c   :  { %908 = vmatpush3.msra.mxu1 %v161_v16  ;;  %874 = vmatprep.subr.mxu0 %v144_v19  ;;  %v662_v16 = vld [vmem:[#allocation5 + $0x8] sm:$0xff] }
  0x5d   :  { %909 = vmatprep.subr.mxu1 %v176_v20  ;;  %875 = vmatpush3.msra.mxu0 %v128_v21 }
  0x5e   :  { %910 = vmatpush3.msra.mxu1 %v160_v22  ;;  %876 = vmatprep.subr.mxu0 %v143_v23  ;;  %v775_v23 = vld [vmem:[%s1298_s6] ss:$0 sm:$0xff] }
  0x5f   :  { %911 = vmatprep.subr.mxu1 %v175_v24  ;;  %877 = vmatpush3.msra.mxu0 %v127_v26 }
  0x60   :  { %490 = vmatprep.mubr.f32.mxu0 %v275_v25  ;;  %912 = vmatpush3.msra.mxu1 %v159_v55 }
  0x61   :  { %560 = vmatprep.mubr.f32.mxu1 %v277_v27  ;;  %491 = vmatmul.mubr.f32.vlgmr.msra.gmra.mxu0 %v274_v28 }
  0x62   :  { %561 = vmatmul.mubr.f32.vlgmr.msra.gmra.mxu1 %v276_v29  ;;  %950 = vmatprep.subr.mxu0 %v1113_v31 }
  0x63   :  { %985 = vmatprep.subr.mxu1 %v1113_v31  ;;  %951 = vmatpush3.msra.mxu0 %v582_v30 }
  0x64   :  { %952 = vmatprep.subr.mxu0 %v1113_v31  ;;  %982 = vmatprep.mubr.msk.f32.mxu0 %vm1114_vm0, %v1113_v31 }
  0x65   :  { %953 = vmatpush3.msra.mxu0 %v581_v32  ;;  %1017 = vmatprep.mubr.msk.f32.mxu1 %vm1114_vm0, %v1113_v31 }
  0x66   :  { %954 = vmatprep.subr.mxu0 %v1113_v31  ;;  %986 = vmatpush3.msra.mxu1 %v676_v47 }
  0x67   :  { %955 = vmatpush3.msra.mxu0 %v580_v33  ;;  %987 = vmatprep.subr.mxu1 %v1113_v31 }
  0x68   :  { %956 = vmatprep.subr.mxu0 %v1113_v31  ;;  %988 = vmatpush3.msra.mxu1 %v675_v48 }
  0x69   :  { %957 = vmatpush3.msra.mxu0 %v579_v34  ;;  %989 = vmatprep.subr.mxu1 %v1113_v31 }
  0x6a   :  { %958 = vmatprep.subr.mxu0 %v1113_v31  ;;  %990 = vmatpush3.msra.mxu1 %v674_v49 }
  0x6b   :  { %959 = vmatpush3.msra.mxu0 %v578_v35  ;;  %991 = vmatprep.subr.mxu1 %v1113_v31 }
  0x6c   :  { %960 = vmatprep.subr.mxu0 %v1113_v31  ;;  %992 = vmatpush3.msra.mxu1 %v673_v50 }
  0x6d   :  { %961 = vmatpush3.msra.mxu0 %v577_v36  ;;  %993 = vmatprep.subr.mxu1 %v1113_v31 }
  0x6e   :  { %962 = vmatprep.subr.mxu0 %v1113_v31  ;;  %994 = vmatpush3.msra.mxu1 %v672_v51 }
  0x6f   :  { %963 = vmatpush3.msra.mxu0 %v576_v37  ;;  %995 = vmatprep.subr.mxu1 %v1113_v31 }
  0x70   :  { %964 = vmatprep.subr.mxu0 %v1113_v31  ;;  %996 = vmatpush3.msra.mxu1 %v671_v52 }
  0x71   :  { %965 = vmatpush3.msra.mxu0 %v575_v38  ;;  %997 = vmatprep.subr.mxu1 %v1113_v31 }
  0x72   :  { %966 = vmatprep.subr.mxu0 %v1113_v31  ;;  %998 = vmatpush3.msra.mxu1 %v670_v53 }
  0x73   :  { %967 = vmatpush3.msra.mxu0 %v574_v39  ;;  %999 = vmatprep.subr.mxu1 %v1113_v31 }
  0x74   :  { %968 = vmatprep.subr.mxu0 %v1113_v31  ;;  %1000 = vmatpush3.msra.mxu1 %v669_v54 }
  0x75   :  { %969 = vmatpush3.msra.mxu0 %v573_v40  ;;  %1001 = vmatprep.subr.mxu1 %v1113_v31 }
  0x76   :  { %970 = vmatprep.subr.mxu0 %v1113_v31  ;;  %1002 = vmatpush3.msra.mxu1 %v668_v56 }
  0x77   :  { %971 = vmatpush3.msra.mxu0 %v572_v41  ;;  %1003 = vmatprep.subr.mxu1 %v1113_v31 }
  0x78   :  { %972 = vmatprep.subr.mxu0 %v1113_v31  ;;  %1004 = vmatpush3.msra.mxu1 %v667_v57 }
  0x79   :  { %973 = vmatpush3.msra.mxu0 %v571_v42  ;;  %1005 = vmatprep.subr.mxu1 %v1113_v31 }
  0x7a   :  { %974 = vmatprep.subr.mxu0 %v1113_v31  ;;  %1006 = vmatpush3.msra.mxu1 %v666_v58 }
  0x7b   :  { %975 = vmatpush3.msra.mxu0 %v570_v43  ;;  %1007 = vmatprep.subr.mxu1 %v1113_v31 }
  0x7c   :  { %976 = vmatprep.subr.mxu0 %v1113_v31  ;;  %1008 = vmatpush3.msra.mxu1 %v665_v59 }
  0x7d   :  { %977 = vmatpush3.msra.mxu0 %v569_v44  ;;  %1009 = vmatprep.subr.mxu1 %v1113_v31 }
  0x7e   :  { %978 = vmatprep.subr.mxu0 %v1113_v31  ;;  %1010 = vmatpush3.msra.mxu1 %v664_v60 }
  0x7f   :  { %979 = vmatpush3.msra.mxu0 %v568_v45  ;;  %1011 = vmatprep.subr.mxu1 %v1113_v31 }
  0x80   :  { %980 = vmatprep.subr.mxu0 %v1113_v31  ;;  %1012 = vmatpush3.msra.mxu1 %v663_v15 }
  0x81   :  { %981 = vmatpush3.msra.mxu0 %v567_v46  ;;  %1013 = vmatprep.subr.mxu1 %v1113_v31 }
  0x82   :  { %1014 = vmatpush3.msra.mxu1 %v662_v16 }
  0x83   :  { %1015 = vmatprep.subr.mxu1 %v1113_v31 }
  0x84   :  { %1016 = vmatpush3.msra.mxu1 %v661_v17 }
  0xff   :  { %v808_v61 = vpop.f32.mrf.mxu0 }
 0x101   :  { %v843_v62 = vpop.f32.mrf.mxu1  ;;  %v809_v63 = vpop.f32.mrf.mxu0 }
 0x102   :  { %v810_v0 = vadd.f32 %v809_v63, %v808_v61 }
 0x103   :  { %v844_v2 = vpop.f32.mrf.mxu1 }
 0x104   :  { %v353_v3 = vadd.f32 %v810_v0, %v773_v1  ;;  %v845_v4 = vadd.f32 %v844_v2, %v843_v62 }
 0x106   :  { %v423_v9 = vadd.f32 %v845_v4, %v353_v3 }
 0x121   :  { %v878_v5 = vpop.f32.mrf.mxu0 }
 0x122   :  { %v913_v6 = vpop.f32.mrf.mxu1 }
 0x123   :  { %v879_v7 = vpop.f32.mrf.mxu0 }
 0x124   :  { %v914_v8 = vpop.f32.mrf.mxu1  ;;  %v880_v10 = vadd.f32 %v879_v7, %v878_v5 }
 0x125   :  { %v915_v12 = vadd.f32 %v914_v8, %v913_v6 }
 0x126   :  { %v493_v11 = vadd.f32 %v880_v10, %v423_v9 }
 0x128   :  { %v563_v13 = vadd.f32 %v915_v12, %v493_v11 }
 0x12a   :  { %v566_v14 = vmax.f32 %v563_v13, 0.0 }
 0x12c   :  { %983 = vmatmul.mubr.f32.vlgmr.msra.gmra.mxu0 %v566_v14 }
 0x1ec   :  { %v656_v19 = vpop.f32.mrf.mxu0 }
 0x1ed   :  { %v657_v20 = vadd.f32 %v774_v18, %v656_v19 }
 0x1ee   :  { %v984_v21 = vpop.f32.mrf.mxu0 }
 0x1ef   :  { %v660_v22 = vmax.f32 %v657_v20, 0.0 }
 0x1f1   :  { %1018 = vmatmul.mubr.f32.vlgmr.msra.gmra.mxu1 %v660_v22 }
 0x2b1   :  { %v750_v24 = vpop.f32.mrf.mxu1 }
 0x2b2   :  { %v751_v25 = vadd.f32 %v775_v23, %v750_v24 }
 0x2b3   :  { %v1019_v26 = vpop.f32.mrf.mxu1 }
 0x2b4   :  { %754 = vst [vmem:[#allocation7] sm:$0xff] %v751_v25 }
 0x2b5   :  { %759 = vsyncadd [#allocation4], 96  ;;  %s1115_s1 = smov [#allocation7]  }
 0x2b6   :  { %s760_s5 = sshll.u32 %s1115_s1, 4  ;;  %s761_s5 = int_to_ptr.vmem [resolvable:$true] %s760_s5 }
 0x2b7   :  { %s1082_s13 = scalar_lea.vmem %s761_s5, 32  ;;  %s1086_s4 = scalar_lea.vmem %s761_s5, 128 }
 0x2b8   :  { %p1083_p10 = scmp.ne.s32.totalorder %s761_s5, %s1082_s13  ;;  %p1087_p11 = scmp.lt.s32.totalorder %s761_s5, %s761_s5 }
 0x2b9   :  { %p1088_p12 = scmp.lt.s32.totalorder %s1086_s4, %s1082_s13 }
 0x2bb   :  { %p1089_p13 = por %p1088_p12, %p1087_p11 }
 0x2bd   :  { %p1090_p0 = pnand %p1089_p13, %p1083_p10 }
 0x2bf   :  { %1093 = shalt.err (!%p1090_p0)
}
 0x2c0   :  { %s1116_s14 = smov 32   ;;  %s1117_s15 = smov 2  }
 0x2c1   :  { %766 = dma.vmem_to_hbm [thread:$0]  %s761_s5, 32, %s1299_s7, [#allocation4], %s1116_s14, %s1116_s14, %s1117_s15  }
 0x2c2   :  { %1106 = dma.done.wait [#allocation4], 128  }
 0x2c3   :  { %1107 = vsyncadd [#allocation4], 4294967168 }
 0x2c4   :  { %770 = vsyncpa [#allocation3], 1 }
 0x2c5   :  { %771 = vsyncpa [#allocation6], 1 }
 0x2c6   :  { %772 = vsyncpa [#allocation4], 1 }

</bundles_post_ra>
